<compile_context>
chip_gen: v5e
topology: v5e:2x2
jax: 0.10.0
libtpu: 0.0.40
codegen_flags: <defaults>
</compile_context>

<pallas_src>
import functools
import math

import jax
import jax.numpy as jnp
from jax import lax
from jax.experimental import pallas as pl
from jax.experimental.pallas import tpu as pltpu


def _mha_kernel(q_ref, k_ref, v_ref,
                wqT_ref, wkT_ref, wvT_ref, wfcT_ref,
                bq_ref, bk_ref, bv_ref, bfc_ref,
                out_ref, attn_ref,
                *, num_heads, depth, matmul_dtype):
    """One (batch, query-tile) grid step; all operands live in VMEM."""
    f32 = jnp.float32

    def mm(a, b):
        # a[M, K] @ b[K, N], MXU, f32 accumulation.
        return lax.dot_general(
            a.astype(matmul_dtype), b.astype(matmul_dtype),
            dimension_numbers=(((1,), (0,)), ((), ())),
            preferred_element_type=f32)

    def mm_nt(a, b):
        # a[M, K] @ b[N, K]^T expressed without a materialized transpose.
        return lax.dot_general(
            a.astype(matmul_dtype), b.astype(matmul_dtype),
            dimension_numbers=(((1,), (1,)), ((), ())),
            preferred_element_type=f32)

    xq = q_ref[0]   # (TQ, F)
    xk = k_ref[0]   # (S,  F)
    xv = v_ref[0]   # (S,  F)

    # Projections.  Weights are pre-transposed on the host (x @ W^T == x @ WT);
    # the 1/sqrt(D) attention scale is already folded into wqT / bq.
    qp = mm(xq, wqT_ref[...]) + bq_ref[...]   # (TQ, F) f32
    kp = mm(xk, wkT_ref[...]) + bk_ref[...]   # (S,  F) f32
    vp = mm(xv, wvT_ref[...]) + bv_ref[...]   # (S,  F) f32

    # Per-head attention via static lane slices (no split/concat transposes).
    ctx_heads = []
    for h in range(num_heads):
        sl = slice(h * depth, (h + 1) * depth)
        q_h = qp[:, sl]                        # (TQ, D)
        k_h = kp[:, sl]                        # (S,  D)
        v_h = vp[:, sl]                        # (S,  D)

        scores = mm_nt(q_h, k_h)               # (TQ, S) f32, scale pre-folded
        m = jnp.max(scores, axis=-1, keepdims=True)
        e = jnp.exp(scores - m)
        denom = jnp.sum(e, axis=-1, keepdims=True)
        attn_h = e * pl.reciprocal(denom, approx=True)   # (TQ, S) f32

        attn_ref[0, h] = attn_h.astype(attn_ref.dtype)
        ctx_heads.append(mm(attn_h, v_h))      # (TQ, D) f32

    # Concatenate heads along lanes (cheap lane-offset placement, no transpose),
    # then a single output projection matmul (K = F for good MXU fill).
    concat = jnp.concatenate(ctx_heads, axis=-1)          # (TQ, F)
    out = mm(concat, wfcT_ref[...]) + bfc_ref[...]
    out_ref[0] = out.astype(out_ref.dtype)

    # TODO(synk): optional `mask` argument of the PyTorch forward is omitted
    # (the reference code path is buggy anyway: it writes an undefined name).


def multi_head_attention(q, k, v, params, *, num_heads,
                         matmul_dtype=jnp.bfloat16):
    """q, k, v: [B, S, F] float32.  params: PyTorch-convention weights.

    Returns (out [B, S, F] f32, attention_weights [B, H, S, S] f32).
    """
    B, S, F = q.shape
    assert k.shape == (B, S, F) and v.shape == (B, S, F)
    assert F % num_heads == 0
    D = F // num_heads

    # ---- host-side parameter prep (once per call, outside the grid loop) ----
    scale = 1.0 / math.sqrt(D)
    wqT = (params['wq_w'].T * scale).astype(matmul_dtype)   # (F, F)
    wkT = params['wk_w'].T.astype(matmul_dtype)
    wvT = params['wv_w'].T.astype(matmul_dtype)
    wfcT = params['fc_w'].T.astype(matmul_dtype)
    bq = (params['wq_b'] * scale).reshape(1, F).astype(jnp.float32)
    bk = params['wk_b'].reshape(1, F).astype(jnp.float32)
    bv = params['wv_b'].reshape(1, F).astype(jnp.float32)
    bfc = params['fc_b'].reshape(1, F).astype(jnp.float32)

    # MXU operands in matmul_dtype (halves q/k/v HBM traffic in bf16 mode).
    qx = q.astype(matmul_dtype)
    kx = k.astype(matmul_dtype)
    vx = v.astype(matmul_dtype)

    # ---- query-axis tiling (bounds the (1, H, TQ, S) attention block) ----
    if S % 256 == 0:
        TQ = min(S, 256)
    elif S % 128 == 0:
        TQ = min(S, 128)
    else:
        TQ = S                     # full-extent block is always legal
    NQ = S // TQ

    kernel = functools.partial(_mha_kernel, num_heads=num_heads, depth=D,
                               matmul_dtype=matmul_dtype)

    # Constant weights/biases: whole-array VMEM residents, no double-buffering.
    const_spec = pl.BlockSpec(memory_space=pltpu.MemorySpace.VMEM)

    q_spec = pl.BlockSpec((1, TQ, F), lambda b, qi: (b, qi, 0))
    kv_spec = pl.BlockSpec((1, S, F), lambda b, qi: (b, 0, 0))

    out, attn = pl.pallas_call(
        kernel,
        out_shape=(jax.ShapeDtypeStruct((B, S, F), jnp.float32),
                   jax.ShapeDtypeStruct((B, num_heads, S, S), jnp.float32)),
        grid=(B, NQ),
        in_specs=[q_spec, kv_spec, kv_spec,
                  const_spec, const_spec, const_spec, const_spec,
                  const_spec, const_spec, const_spec, const_spec],
        out_specs=(pl.BlockSpec((1, TQ, F), lambda b, qi: (b, qi, 0)),
                   pl.BlockSpec((1, num_heads, TQ, S),
                                lambda b, qi: (b, 0, qi, 0))),
        compiler_params=pltpu.CompilerParams(
            dimension_semantics=("parallel", "parallel"),
            vmem_limit_bytes=48 * 1024 * 1024),   # stays under v7x's 64 MiB
    )(qx, kx, vx, wqT, wkT, wvT, wfcT, bq, bk, bv, bfc)
    return out, attn


def _reference(q, k, v, params, *, num_heads):
    """Pure-JAX f32 reference mirroring the PyTorch forward."""
    B, S, F = q.shape
    D = F // num_heads

    def lin(x, w, b):
        return x @ w.T + b

    qp = lin(q, params['wq_w'], params['wq_b'])
    kp = lin(k, params['wk_w'], params['wk_b'])
    vp = lin(v, params['wv_w'], params['wv_b'])

    def split(x):
        return x.reshape(B, S, num_heads, D).transpose(0, 2, 1, 3)

    qh, kh, vh = split(qp), split(kp), split(vp)
    scores = jnp.einsum('bhqd,bhkd->bhqk', qh, kh) / jnp.sqrt(jnp.float32(D))
    attn = jax.nn.softmax(scores, axis=-1)
    ctx = jnp.einsum('bhqk,bhkd->bhqd', attn, vh)
    concat = ctx.transpose(0, 2, 1, 3).reshape(B, S, F)
    out = lin(concat, params['fc_w'], params['fc_b'])
    return out, attn


if __name__ == "__main__":
    B, S, F, H = 2, 8, 32, 4
    # TODO(synk): at these toy shapes vregs are mostly padding; the tiling /
    # bf16 choices only pay off at transformer-scale S and F (multiples of 128).

    key = jax.random.PRNGKey(0)
    keys = jax.random.split(key, 11)

    # Deterministic parameter init (PyTorch nn.Linear shapes: W [F, F], b [F]).
    scale = 1.0 / math.sqrt(F)
    params = {
        'wq_w': jax.random.uniform(keys[0], (F, F), jnp.float32, -scale, scale),
        'wq_b': jax.random.uniform(keys[1], (F,), jnp.float32, -scale, scale),
        'wk_w': jax.random.uniform(keys[2], (F, F), jnp.float32, -scale, scale),
        'wk_b': jax.random.uniform(keys[3], (F,), jnp.float32, -scale, scale),
        'wv_w': jax.random.uniform(keys[4], (F, F), jnp.float32, -scale, scale),
        'wv_b': jax.random.uniform(keys[5], (F,), jnp.float32, -scale, scale),
        'fc_w': jax.random.uniform(keys[6], (F, F), jnp.float32, -scale, scale),
        'fc_b': jax.random.uniform(keys[7], (F,), jnp.float32, -scale, scale),
    }

    q = jax.random.normal(keys[8], (B, S, F), jnp.float32)
    k = jax.random.normal(keys[9], (B, S, F), jnp.float32)
    v = jax.random.normal(keys[10], (B, S, F), jnp.float32)

    ref_out, ref_attn = _reference(q, k, v, params, num_heads=H)

    # Fast path: bf16 MXU operands + f32 accumulation (loose tolerance).
    out, attn = multi_head_attention(q, k, v, params, num_heads=H,
                                     matmul_dtype=jnp.bfloat16)
    jax.block_until_ready((out, attn))
    assert jnp.allclose(out, ref_out, atol=8e-2, rtol=8e-2)
    assert jnp.allclose(attn, ref_attn, atol=5e-2, rtol=5e-2)

    # f32 verification path (only the approx reciprocal differs from ref math).
    out32, attn32 = multi_head_attention(q, k, v, params, num_heads=H,
                                         matmul_dtype=jnp.float32)
    jax.block_until_ready((out32, attn32))
    assert jnp.allclose(out32, ref_out, atol=2e-2, rtol=2e-2)
    assert jnp.allclose(attn32, ref_attn, atol=1e-2, rtol=1e-2)

    print("KERNEL_OK")
</pallas_src>

<mosaic_0001>
module attributes {stable_mosaic.version = 11 : i64} {
  func.func @_mha_kernel(%arg0: i32, %arg1: i32, %arg2: memref<1x8x32xbf16, #tpu.memory_space<vmem>>, %arg3: memref<1x8x32xbf16, #tpu.memory_space<vmem>>, %arg4: memref<1x8x32xbf16, #tpu.memory_space<vmem>>, %arg5: memref<32x32xbf16, #tpu.memory_space<vmem>>, %arg6: memref<32x32xbf16, #tpu.memory_space<vmem>>, %arg7: memref<32x32xbf16, #tpu.memory_space<vmem>>, %arg8: memref<32x32xbf16, #tpu.memory_space<vmem>>, %arg9: memref<1x32xf32, #tpu.memory_space<vmem>>, %arg10: memref<1x32xf32, #tpu.memory_space<vmem>>, %arg11: memref<1x32xf32, #tpu.memory_space<vmem>>, %arg12: memref<1x32xf32, #tpu.memory_space<vmem>>, %arg13: memref<1x8x32xf32, #tpu.memory_space<vmem>>, %arg14: memref<1x4x8x8xf32, #tpu.memory_space<vmem>>) attributes {dimension_semantics = [#tpu.dimension_semantics<parallel>, #tpu.dimension_semantics<parallel>], iteration_bounds = array<i64: 2, 1>, scalar_prefetch = 0 : i64, scratch_operands = 0 : i64, tpu.core_type = #tpu.core_type<tc>, window_params = [{transform_indices = @transform_0, window_bounds = array<i64: 1, 8, 32>}, {transform_indices = @transform_1, window_bounds = array<i64: 1, 8, 32>}, {transform_indices = @transform_2, window_bounds = array<i64: 1, 8, 32>}, {pipeline_mode = #tpu.pipeline_mode<synchronous>, transform_indices = @transform_3, window_bounds = array<i64: 32, 32>}, {pipeline_mode = #tpu.pipeline_mode<synchronous>, transform_indices = @transform_4, window_bounds = array<i64: 32, 32>}, {pipeline_mode = #tpu.pipeline_mode<synchronous>, transform_indices = @transform_5, window_bounds = array<i64: 32, 32>}, {pipeline_mode = #tpu.pipeline_mode<synchronous>, transform_indices = @transform_6, window_bounds = array<i64: 32, 32>}, {pipeline_mode = #tpu.pipeline_mode<synchronous>, transform_indices = @transform_7, window_bounds = array<i64: 1, 32>}, {pipeline_mode = #tpu.pipeline_mode<synchronous>, transform_indices = @transform_8, window_bounds = array<i64: 1, 32>}, {pipeline_mode = #tpu.pipeline_mode<synchronous>, transform_indices = @transform_9, window_bounds = array<i64: 1, 32>}, {pipeline_mode = #tpu.pipeline_mode<synchronous>, transform_indices = @transform_10, window_bounds = array<i64: 1, 32>}, {transform_indices = @transform_11, window_bounds = array<i64: 1, 8, 32>}, {transform_indices = @transform_12, window_bounds = array<i64: 1, 4, 8, 8>}]} {
    %c0 = arith.constant 0 : index
    %c0_0 = arith.constant 0 : index
    %c0_1 = arith.constant 0 : index
    %0 = vector.load %arg2[%c0, %c0_0, %c0_1] : memref<1x8x32xbf16, #tpu.memory_space<vmem>>, vector<1x8x32xbf16>
    %1 = vector.shape_cast %0 : vector<1x8x32xbf16> to vector<8x32xbf16>
    %c0_2 = arith.constant 0 : index
    %c0_3 = arith.constant 0 : index
    %c0_4 = arith.constant 0 : index
    %2 = vector.load %arg3[%c0_2, %c0_3, %c0_4] : memref<1x8x32xbf16, #tpu.memory_space<vmem>>, vector<1x8x32xbf16>
    %3 = vector.shape_cast %2 : vector<1x8x32xbf16> to vector<8x32xbf16>
    %c0_5 = arith.constant 0 : index
    %c0_6 = arith.constant 0 : index
    %c0_7 = arith.constant 0 : index
    %4 = vector.load %arg4[%c0_5, %c0_6, %c0_7] : memref<1x8x32xbf16, #tpu.memory_space<vmem>>, vector<1x8x32xbf16>
    %5 = vector.shape_cast %4 : vector<1x8x32xbf16> to vector<8x32xbf16>
    %c0_8 = arith.constant 0 : index
    %c0_9 = arith.constant 0 : index
    %6 = vector.load %arg5[%c0_8, %c0_9] : memref<32x32xbf16, #tpu.memory_space<vmem>>, vector<32x32xbf16>
    %cst = arith.constant dense<0.000000e+00> : vector<8x32xf32>
    %7 = tpu.matmul %1, %6, %cst {dimension_numbers = #tpu.dot_dimension_numbers<[1], [0], [0], [1], [0, 0, 1, 1], [], []>} : vector<8x32xbf16>, vector<32x32xbf16>, vector<8x32xf32> -> vector<8x32xf32>
    %c0_10 = arith.constant 0 : index
    %c0_11 = arith.constant 0 : index
    %8 = vector.load %arg9[%c0_10, %c0_11] : memref<1x32xf32, #tpu.memory_space<vmem>>, vector<1x32xf32>
    %9 = vector.broadcast %8 : vector<1x32xf32> to vector<8x32xf32>
    %10 = arith.addf %7, %9 : vector<8x32xf32>
    %c0_12 = arith.constant 0 : index
    %c0_13 = arith.constant 0 : index
    %11 = vector.load %arg6[%c0_12, %c0_13] : memref<32x32xbf16, #tpu.memory_space<vmem>>, vector<32x32xbf16>
    %cst_14 = arith.constant dense<0.000000e+00> : vector<8x32xf32>
    %12 = tpu.matmul %3, %11, %cst_14 {dimension_numbers = #tpu.dot_dimension_numbers<[1], [0], [0], [1], [0, 0, 1, 1], [], []>} : vector<8x32xbf16>, vector<32x32xbf16>, vector<8x32xf32> -> vector<8x32xf32>
    %c0_15 = arith.constant 0 : index
    %c0_16 = arith.constant 0 : index
    %13 = vector.load %arg10[%c0_15, %c0_16] : memref<1x32xf32, #tpu.memory_space<vmem>>, vector<1x32xf32>
    %14 = vector.broadcast %13 : vector<1x32xf32> to vector<8x32xf32>
    %15 = arith.addf %12, %14 : vector<8x32xf32>
    %c0_17 = arith.constant 0 : index
    %c0_18 = arith.constant 0 : index
    %16 = vector.load %arg7[%c0_17, %c0_18] : memref<32x32xbf16, #tpu.memory_space<vmem>>, vector<32x32xbf16>
    %cst_19 = arith.constant dense<0.000000e+00> : vector<8x32xf32>
    %17 = tpu.matmul %5, %16, %cst_19 {dimension_numbers = #tpu.dot_dimension_numbers<[1], [0], [0], [1], [0, 0, 1, 1], [], []>} : vector<8x32xbf16>, vector<32x32xbf16>, vector<8x32xf32> -> vector<8x32xf32>
    %c0_20 = arith.constant 0 : index
    %c0_21 = arith.constant 0 : index
    %18 = vector.load %arg11[%c0_20, %c0_21] : memref<1x32xf32, #tpu.memory_space<vmem>>, vector<1x32xf32>
    %19 = vector.broadcast %18 : vector<1x32xf32> to vector<8x32xf32>
    %20 = arith.addf %17, %19 : vector<8x32xf32>
    %21 = vector.extract_strided_slice %10 {offsets = [0, 0], sizes = [8, 8], strides = [1, 1]} : vector<8x32xf32> to vector<8x8xf32>
    %22 = vector.extract_strided_slice %15 {offsets = [0, 0], sizes = [8, 8], strides = [1, 1]} : vector<8x32xf32> to vector<8x8xf32>
    %23 = vector.extract_strided_slice %20 {offsets = [0, 0], sizes = [8, 8], strides = [1, 1]} : vector<8x32xf32> to vector<8x8xf32>
    %24 = arith.truncf %21 : vector<8x8xf32> to vector<8x8xbf16>
    %25 = arith.truncf %22 : vector<8x8xf32> to vector<8x8xbf16>
    %cst_22 = arith.constant dense<0.000000e+00> : vector<8x8xf32>
    %26 = tpu.matmul %24, %25, %cst_22 {dimension_numbers = #tpu.dot_dimension_numbers<[1], [1], [0], [0], [0, 0, 1, 0], [], []>} : vector<8x8xbf16>, vector<8x8xbf16>, vector<8x8xf32> -> vector<8x8xf32>
    %cst_23 = arith.constant dense<0xFF800000> : vector<8xf32>
    %27 = vector.multi_reduction <maximumf>, %26, %cst_23 [1] : vector<8x8xf32> to vector<8xf32>
    %28 = vector.shape_cast %27 : vector<8xf32> to vector<8x1xf32>
    %29 = vector.broadcast %28 : vector<8x1xf32> to vector<8x8xf32>
    %30 = arith.subf %26, %29 : vector<8x8xf32>
    %31 = math.exp %30 : vector<8x8xf32>
    %cst_24 = arith.constant dense<0.000000e+00> : vector<8xf32>
    %32 = vector.multi_reduction <add>, %31, %cst_24 [1] : vector<8x8xf32> to vector<8xf32>
    %33 = vector.shape_cast %32 : vector<8xf32> to vector<8x1xf32>
    %34 = tpu.reciprocal %33 {approx = true} : vector<8x1xf32> -> vector<8x1xf32>
    %35 = vector.broadcast %34 : vector<8x1xf32> to vector<8x8xf32>
    %36 = arith.mulf %31, %35 : vector<8x8xf32>
    %c0_25 = arith.constant 0 : index
    %c0_26 = arith.constant 0 : index
    %c0_27 = arith.constant 0 : index
    %c0_28 = arith.constant 0 : index
    %37 = vector.load %arg14[%c0_25, %c0_26, %c0_27, %c0_28] : memref<1x4x8x8xf32, #tpu.memory_space<vmem>>, vector<1x1x8x8xf32>
    %38 = vector.shape_cast %37 : vector<1x1x8x8xf32> to vector<8x8xf32>
    %39 = vector.shape_cast %36 : vector<8x8xf32> to vector<1x1x8x8xf32>
    tpu.vector_store %arg14[%c0_25, %c0_26, %c0_27, %c0_28], %39 {strides = array<i32>} : memref<1x4x8x8xf32, #tpu.memory_space<vmem>>, vector<1x1x8x8xf32>,
    %40 = arith.truncf %36 : vector<8x8xf32> to vector<8x8xbf16>
    %41 = arith.truncf %23 : vector<8x8xf32> to vector<8x8xbf16>
    %cst_29 = arith.constant dense<0.000000e+00> : vector<8x8xf32>
    %42 = tpu.matmul %40, %41, %cst_29 {dimension_numbers = #tpu.dot_dimension_numbers<[1], [0], [0], [1], [0, 0, 1, 1], [], []>} : vector<8x8xbf16>, vector<8x8xbf16>, vector<8x8xf32> -> vector<8x8xf32>
    %43 = vector.extract_strided_slice %10 {offsets = [0, 8], sizes = [8, 8], strides = [1, 1]} : vector<8x32xf32> to vector<8x8xf32>
    %44 = vector.extract_strided_slice %15 {offsets = [0, 8], sizes = [8, 8], strides = [1, 1]} : vector<8x32xf32> to vector<8x8xf32>
    %45 = vector.extract_strided_slice %20 {offsets = [0, 8], sizes = [8, 8], strides = [1, 1]} : vector<8x32xf32> to vector<8x8xf32>
    %46 = arith.truncf %43 : vector<8x8xf32> to vector<8x8xbf16>
    %47 = arith.truncf %44 : vector<8x8xf32> to vector<8x8xbf16>
    %cst_30 = arith.constant dense<0.000000e+00> : vector<8x8xf32>
    %48 = tpu.matmul %46, %47, %cst_30 {dimension_numbers = #tpu.dot_dimension_numbers<[1], [1], [0], [0], [0, 0, 1, 0], [], []>} : vector<8x8xbf16>, vector<8x8xbf16>, vector<8x8xf32> -> vector<8x8xf32>
    %cst_31 = arith.constant dense<0xFF800000> : vector<8xf32>
    %49 = vector.multi_reduction <maximumf>, %48, %cst_31 [1] : vector<8x8xf32> to vector<8xf32>
    %50 = vector.shape_cast %49 : vector<8xf32> to vector<8x1xf32>
    %51 = vector.broadcast %50 : vector<8x1xf32> to vector<8x8xf32>
    %52 = arith.subf %48, %51 : vector<8x8xf32>
    %53 = math.exp %52 : vector<8x8xf32>
    %cst_32 = arith.constant dense<0.000000e+00> : vector<8xf32>
    %54 = vector.multi_reduction <add>, %53, %cst_32 [1] : vector<8x8xf32> to vector<8xf32>
    %55 = vector.shape_cast %54 : vector<8xf32> to vector<8x1xf32>
    %56 = tpu.reciprocal %55 {approx = true} : vector<8x1xf32> -> vector<8x1xf32>
    %57 = vector.broadcast %56 : vector<8x1xf32> to vector<8x8xf32>
    %58 = arith.mulf %53, %57 : vector<8x8xf32>
    %c0_33 = arith.constant 0 : index
    %c1 = arith.constant 1 : index
    %c0_34 = arith.constant 0 : index
    %c0_35 = arith.constant 0 : index
    %59 = vector.load %arg14[%c0_33, %c1, %c0_34, %c0_35] : memref<1x4x8x8xf32, #tpu.memory_space<vmem>>, vector<1x1x8x8xf32>
    %60 = vector.shape_cast %59 : vector<1x1x8x8xf32> to vector<8x8xf32>
    %61 = vector.shape_cast %58 : vector<8x8xf32> to vector<1x1x8x8xf32>
    tpu.vector_store %arg14[%c0_33, %c1, %c0_34, %c0_35], %61 {strides = array<i32>} : memref<1x4x8x8xf32, #tpu.memory_space<vmem>>, vector<1x1x8x8xf32>,
    %62 = arith.truncf %58 : vector<8x8xf32> to vector<8x8xbf16>
    %63 = arith.truncf %45 : vector<8x8xf32> to vector<8x8xbf16>
    %cst_36 = arith.constant dense<0.000000e+00> : vector<8x8xf32>
    %64 = tpu.matmul %62, %63, %cst_36 {dimension_numbers = #tpu.dot_dimension_numbers<[1], [0], [0], [1], [0, 0, 1, 1], [], []>} : vector<8x8xbf16>, vector<8x8xbf16>, vector<8x8xf32> -> vector<8x8xf32>
    %65 = vector.extract_strided_slice %10 {offsets = [0, 16], sizes = [8, 8], strides = [1, 1]} : vector<8x32xf32> to vector<8x8xf32>
    %66 = vector.extract_strided_slice %15 {offsets = [0, 16], sizes = [8, 8], strides = [1, 1]} : vector<8x32xf32> to vector<8x8xf32>
    %67 = vector.extract_strided_slice %20 {offsets = [0, 16], sizes = [8, 8], strides = [1, 1]} : vector<8x32xf32> to vector<8x8xf32>
    %68 = arith.truncf %65 : vector<8x8xf32> to vector<8x8xbf16>
    %69 = arith.truncf %66 : vector<8x8xf32> to vector<8x8xbf16>
    %cst_37 = arith.constant dense<0.000000e+00> : vector<8x8xf32>
    %70 = tpu.matmul %68, %69, %cst_37 {dimension_numbers = #tpu.dot_dimension_numbers<[1], [1], [0], [0], [0, 0, 1, 0], [], []>} : vector<8x8xbf16>, vector<8x8xbf16>, vector<8x8xf32> -> vector<8x8xf32>
    %cst_38 = arith.constant dense<0xFF800000> : vector<8xf32>
    %71 = vector.multi_reduction <maximumf>, %70, %cst_38 [1] : vector<8x8xf32> to vector<8xf32>
    %72 = vector.shape_cast %71 : vector<8xf32> to vector<8x1xf32>
    %73 = vector.broadcast %72 : vector<8x1xf32> to vector<8x8xf32>
    %74 = arith.subf %70, %73 : vector<8x8xf32>
    %75 = math.exp %74 : vector<8x8xf32>
    %cst_39 = arith.constant dense<0.000000e+00> : vector<8xf32>
    %76 = vector.multi_reduction <add>, %75, %cst_39 [1] : vector<8x8xf32> to vector<8xf32>
    %77 = vector.shape_cast %76 : vector<8xf32> to vector<8x1xf32>
    %78 = tpu.reciprocal %77 {approx = true} : vector<8x1xf32> -> vector<8x1xf32>
    %79 = vector.broadcast %78 : vector<8x1xf32> to vector<8x8xf32>
    %80 = arith.mulf %75, %79 : vector<8x8xf32>
    %c0_40 = arith.constant 0 : index
    %c2 = arith.constant 2 : index
    %c0_41 = arith.constant 0 : index
    %c0_42 = arith.constant 0 : index
    %81 = vector.load %arg14[%c0_40, %c2, %c0_41, %c0_42] : memref<1x4x8x8xf32, #tpu.memory_space<vmem>>, vector<1x1x8x8xf32>
    %82 = vector.shape_cast %81 : vector<1x1x8x8xf32> to vector<8x8xf32>
    %83 = vector.shape_cast %80 : vector<8x8xf32> to vector<1x1x8x8xf32>
    tpu.vector_store %arg14[%c0_40, %c2, %c0_41, %c0_42], %83 {strides = array<i32>} : memref<1x4x8x8xf32, #tpu.memory_space<vmem>>, vector<1x1x8x8xf32>,
    %84 = arith.truncf %80 : vector<8x8xf32> to vector<8x8xbf16>
    %85 = arith.truncf %67 : vector<8x8xf32> to vector<8x8xbf16>
    %cst_43 = arith.constant dense<0.000000e+00> : vector<8x8xf32>
    %86 = tpu.matmul %84, %85, %cst_43 {dimension_numbers = #tpu.dot_dimension_numbers<[1], [0], [0], [1], [0, 0, 1, 1], [], []>} : vector<8x8xbf16>, vector<8x8xbf16>, vector<8x8xf32> -> vector<8x8xf32>
    %87 = vector.extract_strided_slice %10 {offsets = [0, 24], sizes = [8, 8], strides = [1, 1]} : vector<8x32xf32> to vector<8x8xf32>
    %88 = vector.extract_strided_slice %15 {offsets = [0, 24], sizes = [8, 8], strides = [1, 1]} : vector<8x32xf32> to vector<8x8xf32>
    %89 = vector.extract_strided_slice %20 {offsets = [0, 24], sizes = [8, 8], strides = [1, 1]} : vector<8x32xf32> to vector<8x8xf32>
    %90 = arith.truncf %87 : vector<8x8xf32> to vector<8x8xbf16>
    %91 = arith.truncf %88 : vector<8x8xf32> to vector<8x8xbf16>
    %cst_44 = arith.constant dense<0.000000e+00> : vector<8x8xf32>
    %92 = tpu.matmul %90, %91, %cst_44 {dimension_numbers = #tpu.dot_dimension_numbers<[1], [1], [0], [0], [0, 0, 1, 0], [], []>} : vector<8x8xbf16>, vector<8x8xbf16>, vector<8x8xf32> -> vector<8x8xf32>
    %cst_45 = arith.constant dense<0xFF800000> : vector<8xf32>
    %93 = vector.multi_reduction <maximumf>, %92, %cst_45 [1] : vector<8x8xf32> to vector<8xf32>
    %94 = vector.shape_cast %93 : vector<8xf32> to vector<8x1xf32>
    %95 = vector.broadcast %94 : vector<8x1xf32> to vector<8x8xf32>
    %96 = arith.subf %92, %95 : vector<8x8xf32>
    %97 = math.exp %96 : vector<8x8xf32>
    %cst_46 = arith.constant dense<0.000000e+00> : vector<8xf32>
    %98 = vector.multi_reduction <add>, %97, %cst_46 [1] : vector<8x8xf32> to vector<8xf32>
    %99 = vector.shape_cast %98 : vector<8xf32> to vector<8x1xf32>
    %100 = tpu.reciprocal %99 {approx = true} : vector<8x1xf32> -> vector<8x1xf32>
    %101 = vector.broadcast %100 : vector<8x1xf32> to vector<8x8xf32>
    %102 = arith.mulf %97, %101 : vector<8x8xf32>
    %c0_47 = arith.constant 0 : index
    %c3 = arith.constant 3 : index
    %c0_48 = arith.constant 0 : index
    %c0_49 = arith.constant 0 : index
    %103 = vector.load %arg14[%c0_47, %c3, %c0_48, %c0_49] : memref<1x4x8x8xf32, #tpu.memory_space<vmem>>, vector<1x1x8x8xf32>
    %104 = vector.shape_cast %103 : vector<1x1x8x8xf32> to vector<8x8xf32>
    %105 = vector.shape_cast %102 : vector<8x8xf32> to vector<1x1x8x8xf32>
    tpu.vector_store %arg14[%c0_47, %c3, %c0_48, %c0_49], %105 {strides = array<i32>} : memref<1x4x8x8xf32, #tpu.memory_space<vmem>>, vector<1x1x8x8xf32>,
    %106 = arith.truncf %102 : vector<8x8xf32> to vector<8x8xbf16>
    %107 = arith.truncf %89 : vector<8x8xf32> to vector<8x8xbf16>
    %cst_50 = arith.constant dense<0.000000e+00> : vector<8x8xf32>
    %108 = tpu.matmul %106, %107, %cst_50 {dimension_numbers = #tpu.dot_dimension_numbers<[1], [0], [0], [1], [0, 0, 1, 1], [], []>} : vector<8x8xbf16>, vector<8x8xbf16>, vector<8x8xf32> -> vector<8x8xf32>
    %109 = tpu.concatenate %42, %64, %86, %108 in 1 : vector<8x8xf32>, vector<8x8xf32>, vector<8x8xf32>, vector<8x8xf32> -> vector<8x32xf32>
    %c0_51 = arith.constant 0 : index
    %c0_52 = arith.constant 0 : index
    %110 = vector.load %arg8[%c0_51, %c0_52] : memref<32x32xbf16, #tpu.memory_space<vmem>>, vector<32x32xbf16>
    %111 = arith.truncf %109 : vector<8x32xf32> to vector<8x32xbf16>
    %cst_53 = arith.constant dense<0.000000e+00> : vector<8x32xf32>
    %112 = tpu.matmul %111, %110, %cst_53 {dimension_numbers = #tpu.dot_dimension_numbers<[1], [0], [0], [1], [0, 0, 1, 1], [], []>} : vector<8x32xbf16>, vector<32x32xbf16>, vector<8x32xf32> -> vector<8x32xf32>
    %c0_54 = arith.constant 0 : index
    %c0_55 = arith.constant 0 : index
    %113 = vector.load %arg12[%c0_54, %c0_55] : memref<1x32xf32, #tpu.memory_space<vmem>>, vector<1x32xf32>
    %114 = vector.broadcast %113 : vector<1x32xf32> to vector<8x32xf32>
    %115 = arith.addf %112, %114 : vector<8x32xf32>
    %c0_56 = arith.constant 0 : index
    %c0_57 = arith.constant 0 : index
    %c0_58 = arith.constant 0 : index
    %116 = vector.load %arg13[%c0_56, %c0_57, %c0_58] : memref<1x8x32xf32, #tpu.memory_space<vmem>>, vector<1x8x32xf32>
    %117 = vector.shape_cast %116 : vector<1x8x32xf32> to vector<8x32xf32>
    %118 = vector.shape_cast %115 : vector<8x32xf32> to vector<1x8x32xf32>
    tpu.vector_store %arg13[%c0_56, %c0_57, %c0_58], %118 {strides = array<i32>} : memref<1x8x32xf32, #tpu.memory_space<vmem>>, vector<1x8x32xf32>,
    return
  }
  func.func @transform_0(%arg0: i32, %arg1: i32) -> (i32, i32, i32) {
    %c0_i32 = arith.constant 0 : i32
    %c0_i32_0 = arith.constant 0 : i32
    return %arg0, %arg1, %c0_i32 : i32, i32, i32
  }
  func.func @transform_1(%arg0: i32, %arg1: i32) -> (i32, i32, i32) {
    %c0_i32 = arith.constant 0 : i32
    %c0_i32_0 = arith.constant 0 : i32
    %c0_i32_1 = arith.constant 0 : i32
    return %arg0, %c0_i32, %c0_i32_0 : i32, i32, i32
  }
  func.func @transform_2(%arg0: i32, %arg1: i32) -> (i32, i32, i32) {
    %c0_i32 = arith.constant 0 : i32
    %c0_i32_0 = arith.constant 0 : i32
    %c0_i32_1 = arith.constant 0 : i32
    return %arg0, %c0_i32, %c0_i32_0 : i32, i32, i32
  }
  func.func @transform_3(%arg0: i32, %arg1: i32) -> (i32, i32) {
    %c0_i32 = arith.constant 0 : i32
    %c0_i32_0 = arith.constant 0 : i32
    %c0_i32_1 = arith.constant 0 : i32
    return %c0_i32, %c0_i32_0 : i32, i32
  }
  func.func @transform_4(%arg0: i32, %arg1: i32) -> (i32, i32) {
    %c0_i32 = arith.constant 0 : i32
    %c0_i32_0 = arith.constant 0 : i32
    %c0_i32_1 = arith.constant 0 : i32
    return %c0_i32, %c0_i32_0 : i32, i32
  }
  func.func @transform_5(%arg0: i32, %arg1: i32) -> (i32, i32) {
    %c0_i32 = arith.constant 0 : i32
    %c0_i32_0 = arith.constant 0 : i32
    %c0_i32_1 = arith.constant 0 : i32
    return %c0_i32, %c0_i32_0 : i32, i32
  }
  func.func @transform_6(%arg0: i32, %arg1: i32) -> (i32, i32) {
    %c0_i32 = arith.constant 0 : i32
    %c0_i32_0 = arith.constant 0 : i32
    %c0_i32_1 = arith.constant 0 : i32
    return %c0_i32, %c0_i32_0 : i32, i32
  }
  func.func @transform_7(%arg0: i32, %arg1: i32) -> (i32, i32) {
    %c0_i32 = arith.constant 0 : i32
    %c0_i32_0 = arith.constant 0 : i32
    %c0_i32_1 = arith.constant 0 : i32
    return %c0_i32, %c0_i32_0 : i32, i32
  }
  func.func @transform_8(%arg0: i32, %arg1: i32) -> (i32, i32) {
    %c0_i32 = arith.constant 0 : i32
    %c0_i32_0 = arith.constant 0 : i32
    %c0_i32_1 = arith.constant 0 : i32
    return %c0_i32, %c0_i32_0 : i32, i32
  }
  func.func @transform_9(%arg0: i32, %arg1: i32) -> (i32, i32) {
    %c0_i32 = arith.constant 0 : i32
    %c0_i32_0 = arith.constant 0 : i32
    %c0_i32_1 = arith.constant 0 : i32
    return %c0_i32, %c0_i32_0 : i32, i32
  }
  func.func @transform_10(%arg0: i32, %arg1: i32) -> (i32, i32) {
    %c0_i32 = arith.constant 0 : i32
    %c0_i32_0 = arith.constant 0 : i32
    %c0_i32_1 = arith.constant 0 : i32
    return %c0_i32, %c0_i32_0 : i32, i32
  }
  func.func @transform_11(%arg0: i32, %arg1: i32) -> (i32, i32, i32) {
    %c0_i32 = arith.constant 0 : i32
    %c0_i32_0 = arith.constant 0 : i32
    return %arg0, %arg1, %c0_i32 : i32, i32, i32
  }
  func.func @transform_12(%arg0: i32, %arg1: i32) -> (i32, i32, i32, i32) {
    %c0_i32 = arith.constant 0 : i32
    %c0_i32_0 = arith.constant 0 : i32
    %c0_i32_1 = arith.constant 0 : i32
    return %arg0, %c0_i32, %arg1, %c0_i32_0 : i32, i32, i32, i32
  }
}

</mosaic_0001>

<bundles_post_ra>
// kernel: tpu_custom_call.1
= control target key start
LH: loop header
LB: loop body
LE: loop exit
PB: predicated region body
PF: predicated region fallthrough
CT: control target
= control target key end

     0   :  { %s2193_s0 = inlined_call_operand.hbm [shape: bf16[2,8,32], index: 0, kind: input, shape index: {}]   ;;  %s2194_s1 = inlined_call_operand.hbm [shape: bf16[2,8,32], index: 1, kind: input, shape index: {}]   ;;  %s2195_s2 = inlined_call_operand.hbm [shape: bf16[2,8,32], index: 2, kind: input, shape index: {}]   ;;  %s2196_s3 = inlined_call_operand.hbm [shape: bf16[32,32], index: 3, kind: input, shape index: {}]   ;;  %s2197_s4 = inlined_call_operand.hbm [shape: bf16[32,32], index: 4, kind: input, shape index: {}]   ;;  %s2198_s5 = inlined_call_operand.hbm [shape: bf16[32,32], index: 5, kind: input, shape index: {}]   ;;  %s2199_s6 = inlined_call_operand.hbm [shape: bf16[32,32], index: 6, kind: input, shape index: {}]   ;;  %s2200_s7 = inlined_call_operand.vmem [shape: f32[1,32], index: 7, kind: input, shape index: {}]   ;;  %s2201_s8 = inlined_call_operand.vmem [shape: f32[1,32], index: 8, kind: input, shape index: {}]   ;;  %s2202_s9 = inlined_call_operand.vmem [shape: f32[1,32], index: 9, kind: input, shape index: {}]   ;;  %s2203_s10 = inlined_call_operand.vmem [shape: f32[1,32], index: 10, kind: input, shape index: {}]   ;;  %s2204_s11 = inlined_call_operand.hbm [shape: f32[2,8,32], index: 11, kind: output, shape index: {0}]   ;;  %s2205_s12 = inlined_call_operand.hbm [shape: f32[2,4,8,8], index: 12, kind: output, shape index: {1}]  }
   0x1   :  { %2219 = sst [smem:[#allocation29_spill]] %s2193_s0 }
   0x2   :  { %2220 = sst [smem:[#allocation30_spill]] %s2194_s1 }
   0x3   :  { %2221 = sst [smem:[#allocation31_spill]] %s2196_s3 }
   0x4   :  { %2222 = sst [smem:[#allocation32_spill]] %s2197_s4 }
   0x5   :  { %2223 = sst [smem:[#allocation33_spill]] %s2198_s5 }
   0x6   :  { %2224 = sst [smem:[#allocation34_spill]] %s2199_s6 }
   0x7   :  { %2225 = sst [smem:[#allocation35_spill]] %s2203_s10 }
   0x8   :  { %2226 = sst [smem:[#allocation36_spill]] %s2204_s11 }
   0x9   :  { %2227 = sst [smem:[#allocation37_spill]] %s2205_s12 }
   0xa   :  { %18 = vsyncpa [#allocation3], 0 }
   0xb   :  { %20 = vsyncpa [#allocation3 + $0x1], 0 }
   0xc   :  { %21 = vsyncpa [#allocation6], 0 }
   0xd   :  { %23 = vsyncpa [#allocation6 + $0x1], 0 }
   0xe   :  { %24 = vsyncpa [#allocation9], 0 }
   0xf   :  { %25 = vsyncpa [#allocation12], 0 }
  0x10   :  { %26 = vsyncpa [#allocation4], 0 }
  0x11   :  { %28 = vsyncpa [#allocation4 + $0x1], 0 }
  0x12   :  { %29 = vsyncpa [#allocation16], 0 }
  0x13   :  { %31 = vsyncpa [#allocation16 + $0x1], 0  ;;  %s1889_s21 = smov 0   ;;  %s1891_s22 = smov 0  }
  0x14   :  { %s1893_s23 = smov 0   ;;  %s1895_s24 = smov 0  }
  0x15   :  { %s1897_s25 = smov 0   ;;  %s1899_s26 = smov 0  }
  0x16 LB: > { %2228 = sst [smem:[#allocation23_spill]] %s1789_s21  ;;  %s1920_s27 = sadd.s32 4294967295, %s1809_s26   ;;  %s1809_s26 = sphi %s1899_s26, %s37_s26   ;;  %s1805_s25 = sphi %s1897_s25, %s2258_s25   ;;  %s1801_s24 = sphi %s1895_s24, %s2257_s24   ;;  %s1797_s23 = sphi %s1893_s23, %s2261_s23   ;;  %s1793_s22 = sphi %s1891_s22, %s2260_s22   ;;  %s1789_s21 = sphi %s1889_s21, %s2259_s21  }
  0x17   : > { %2229 = sst [smem:[#allocation24_spill]] %s1805_s25  ;;  %p1241_p0 = scmp.ge.s32.totalorder %s1809_s26, 1 }
  0x18   : > { %2230 = sst [smem:[#allocation25_spill]] %s1809_s26  ;;  %p72_p1 = scmp.eq.s32.totalorder %s1920_s27, 0 }
  0x19   : > { %p358_p2 = scmp.lt.s32.totalorder %s1809_s26, 3  ;;  %s2231_s3 = sld [smem:[#allocation31_spill]] }
  0x1a   : > { %s1811_s14 = smov [#allocation8]   ;;  %p1246_p6 = scmp.ge.s32.totalorder %s1809_s26, 2 }
  0x1b   : > { %p1928_p3 = pnand %p1241_p0, %p358_p2  ;;  %s371_s15 = sshll.u32 %s1811_s14, 4  ;;  %s372_s15 = int_to_ptr.vmem [resolvable:$true] %s371_s15 }
  0x1c   : > { %s2234_s5 = sld [smem:[#allocation33_spill]]  ;;  %s2206_s20 = smov 64  }
  0x1d   : > { %p1352_p4 = pneg %p1928_p3  ;;  %s2208_s28 = smov 4  }
  0x1e   : > { %s1814_s29 = smov [#allocation11]   ;;  %s1240_s17 = sadd.s32 4294967294, %s1809_s26  }
  0x1f   : > { %s369_s30 = sshll.u32 %s2231_s3, 4  ;;  %p1936_p5 = pnand %p1352_p4, %p72_p1  ;;  %s370_s30 = int_to_ptr.hbm [resolvable:$true] %s369_s30 }
  0x20   : > { %s399_s14 = sshll.u32 %s1814_s29, 4  ;;  %s49_s18 = sadd.s32 1, %s1805_s25  ;;  %s400_s14 = int_to_ptr.vmem [resolvable:$true] %s399_s14 }
  0x21   : > { %1355 = dma.hbm_to_vmem [thread:$0]  (!%p1936_p5), %s370_s30, 256, %s372_s15, [#allocation9], %s2206_s20, %s2206_s20, %s2208_s28  }
  0x22   : > { %s397_s19 = sshll.u32 %s2234_s5, 4  ;;  %p51_p7 = scmp.ge.s32.totalorder %s49_s18, 2  ;;  %s398_s19 = int_to_ptr.hbm [resolvable:$true] %s397_s19 }
  0x23   : > { %1361 = dma.hbm_to_vmem [thread:$0]  (!%p1936_p5), %s398_s19, 256, %s400_s14, [#allocation12], %s2206_s20, %s2206_s20, %s2208_s28  }
  0x24   : > { %s58_s3 = sadd.s32 1, %s1797_s23  ;;  %p65_p8 = scmp.ne.s32.totalorder %s1797_s23, %s1793_s22 }
  0x25   : > { %p66_p9 = scmp.eq.s32.totalorder %s1809_s26, 0  ;;  %s2263_s18 = smov (%p51_p7, %s49_s18), 0 }
  0x26   : > { %2235 = sst [smem:[#allocation26_spill]] %s2263_s18  ;;  %p71_p11 = scmp.ne.s32.totalorder %s1793_s22, %s1789_s21 }
  0x27   : > { %p1962_p10 = por %p66_p9, %p65_p8  ;;  %s53_s15 = ssub.s32 %s1805_s25, %s2263_s18 }
  0x28   : > { %p317_p12 = scmp.eq.s32.totalorder %s1920_s27, 1  ;;  %p56_p13 = scmp.eq.s32.totalorder %s53_s15, 0 }
  0x29   : > { %p1973_p0 = por %p72_p1, %p71_p11  ;;  %p323_p4 = scmp.eq.s32.totalorder %s1240_s17, 1 }
  0x2a   : > { %p1977_p2 = por %p317_p12, %p65_p8  ;;  %p1386_p9 = scmp.lt.s32.totalorder %s1809_s26, 2 }
  0x2b   : > { %s1982_s14 = scalar_select %p56_p13, %s1797_s23, %s58_s3  }
  0x2c   : > { %p1984_p7 = por %p323_p4, %p71_p11  ;;  %s2214_s28 = sand.u32 1, %s1797_s23  }
  0x2d   : > { %2239 = sst [smem:[#allocation27_spill]] %s1982_s14  ;;  %s1991_s5 = sshll.u32 %s1805_s25, 2 }
  0x2e   : > { %s2240_s20 = scalar_select %p1984_p7, 1, 0 }
  0x2f   : > { %s1995_s15 = sshll.u32 %s2214_s28, 2  ;;  %p1999_p8 = pnand %p1386_p9, %p1962_p10 }
  0x30   : > { %2241 = sst [smem:[#allocation28_spill]] %s2240_s20  ;;  %s459_s3 = sand.u32 1, %s1809_s26  }
  0x31   : > { %s2243_s1 = sld [smem:[#allocation30_spill]]  ;;  %s463_s21 = scalar_lea.vmem [#allocation5], %s1995_s15 }
  0x32   : > { %s471_s25 = sshll.u32 %s463_s21, 4  ;;  %s2244_s4 = sld [smem:[#allocation32_spill]]  ;;  %s472_s25 = int_to_ptr.vmem [resolvable:$true] %s471_s25 }
  0x33   : > { %s460_s12 = scalar_lea.sflag [#allocation6], %s459_s3  ;;  %s1815_s26 = smov [#allocation10]  }
  0x34   : > { %s385_s14 = sshll.u32 %s1815_s26, 4  ;;  %s2245_s6 = sld [smem:[#allocation34_spill]]  ;;  %s386_s14 = int_to_ptr.vmem [resolvable:$true] %s385_s14 }
  0x35   : > { %s2247_s28 = smov 64   ;;  %s1816_s3 = smov [#allocation13]  }
  0x36   : > { %s2248_s0 = sld [smem:[#allocation29_spill]]  ;;  %s443_s17 = scalar_lea.vmem [#allocation2], %s1995_s15 }
  0x37   : > { %s467_s20 = scalar_lea.hbm %s2243_s1, %s1991_s5 }
  0x38   : > { %s469_s10 = sshll.u32 %s467_s20, 4  ;;  %s383_s11 = sshll.u32 %s2244_s4, 4  ;;  %s470_s10 = int_to_ptr.hbm [resolvable:$true] %s469_s10  ;;  %s384_s11 = int_to_ptr.hbm [resolvable:$true] %s383_s11 }
  0x39   : > { %1371 = dma.hbm_to_vmem [thread:$0]  (!%p1999_p8), %s470_s10, 64, %s472_s25, %s460_s12  }
  0x3a   : > { %s411_s21 = sshll.u32 %s2245_s6, 4  ;;  %s2246_s20 = smov 4   ;;  %s412_s21 = int_to_ptr.hbm [resolvable:$true] %s411_s21 }
  0x3b   : > { %1358 = dma.hbm_to_vmem [thread:$0]  (!%p1936_p5), %s384_s11, 256, %s386_s14, [#allocation9], %s2247_s28, %s2247_s28, %s2246_s20  }
  0x3c   : > { %s413_s10 = sshll.u32 %s1816_s3, 4  ;;  %s448_s26 = scalar_lea.hbm %s2248_s0, %s1991_s5  ;;  %s414_s10 = int_to_ptr.vmem [resolvable:$true] %s413_s10 }
  0x3d   : > { %1364 = dma.hbm_to_vmem [thread:$0]  (!%p1936_p5), %s412_s21, 256, %s414_s10, [#allocation12], %s2247_s28, %s2247_s28, %s2246_s20  }
  0x3e   : > { %s450_s1 = sshll.u32 %s448_s26, 4  ;;  %s452_s4 = sshll.u32 %s443_s17, 4  ;;  %s451_s1 = int_to_ptr.hbm [resolvable:$true] %s450_s1  ;;  %s453_s4 = int_to_ptr.vmem [resolvable:$true] %s452_s4 }
  0x3f   : > { %s2249_s6 = sand.u32 1, %s1797_s23   ;;  %s486_s25 = scalar_lea.hbm %s2195_s2, %s1991_s5 }
  0x40   : > { %s440_s11 = scalar_lea.sflag [#allocation3], %s2249_s6  ;;  %s488_s30 = sshll.u32 %s486_s25, 4  ;;  %s489_s30 = int_to_ptr.hbm [resolvable:$true] %s488_s30 }
  0x41   : > { %1368 = dma.hbm_to_vmem [thread:$0]  (!%p1999_p8), %s451_s1, 64, %s453_s4, %s440_s11  }
  0x42   : > { %s482_s0 = scalar_lea.vmem [#allocation7], %s1995_s15  ;;  %499 = sbr.rel (%p1928_p3) target bundleno = 1148 (0x47c), region = 64 }
  0x43   : > { %s490_s16 = sshll.u32 %s482_s0, 4  ;;  %s2046_s21 = sand.u32 (!%p1928_p3), 1, %s1793_s22   ;;  %s491_s16 = int_to_ptr.vmem [resolvable:$true] %s490_s16 }
  0x44   : > { %1374 = dma.hbm_to_vmem [thread:$0]  (!%p1999_p8), %s489_s30, 64, %s491_s16, %s460_s12  }
  0x45   : > { %s2049_s4 = sshll.u32 (!%p1928_p3), %s2046_s21, 2  ;;  %s502_s5 = scalar_lea.sflag (!%p1928_p3), [#allocation3], %s2046_s21 }
  0x46   : > { %s505_s6 = scalar_lea.vmem (!%p1928_p3), [#allocation2], %s2049_s4 }
  0x47   : > { %1764 = dma.done.wait (%p1973_p0), %s502_s5, 64  }
  0x48   : > { %1766 = vsyncadd (%p1973_p0), %s502_s5, 4294967232  ;;  %s511_s0 = sand.u32 1, %s1920_s27   ;;  %s515_s13 = scalar_lea.vmem [#allocation5], %s2049_s4 }
  0x49   : > { %s512_s12 = scalar_lea.sflag [#allocation6], %s511_s0 }
  0x4a   : > { %1768 = dma.done.wait (%p1973_p0), %s512_s12, 128  }
  0x4b   : > { %1770 = vsyncadd (%p1973_p0), %s512_s12, 4294967168  ;;  %s525_s18 = scalar_lea.vmem [#allocation7], %s2049_s4 }
  0x4c   : > { %1772 = dma.done.wait (%p72_p1), [#allocation9], 512  }
  0x4d   : > { %1774 = vsyncadd (%p72_p1), [#allocation9], 4294966784 }
  0x4e   : > { %1776 = dma.done.wait (%p72_p1), [#allocation12], 512  }
  0x4f   : > { %1778 = vsyncadd (%p72_p1), [#allocation12], 4294966784  ;;  %v1318_v0 = vld [vmem:[#allocation8 + $0x8] sm:$0xff]  ;;  %v1320_v1 = vld [vmem:[#allocation10 + $0x8] sm:$0xff]  ;;  %vm626_vm0 = vcmask 261120   ;;  %vm717_vm1 = vcmask 64512  }
  0x50   : > { %v1317_v2 = vld [vmem:[#allocation8] sm:$0xff]  ;;  %636 = vmatpush.bf16.msra.mxu0 %v1318_v0  ;;  %672 = vmatpush.bf16.msra.mxu1 %v1320_v1  ;;  %v1319_v3 = vld [vmem:[#allocation10] sm:$0xff]  ;;  %v603_v4 = vld [vmem:[%s505_s6] sm:$0xf]  ;;  %s1817_s28 = smov 112   ;;  %s1818_s10 = smov 120  }
  0x51   : > { %v604_v5 = vld [vmem:[%s515_s13] sm:$0xf]  ;;  %v1453_v6 = vld [vmem:[%s2200_s7] ss:$0 sm:$0xff]  ;;  %s1819_s26 = smov 104   ;;  %v1321_v30 = vld [vmem:[#allocation11] sm:$0xff] }
  0x52   : > { %v1454_v7 = vld [vmem:[%s2201_s8] ss:$0 sm:$0xff]  ;;  %v605_v31 = vld [vmem:[%s525_s18] sm:$0xf]  ;;  %vm754_vm2 = vcmask 1043456   ;;  %s1262_s11 = sshll.u32 %s2046_s21, 5 }
  0x53   : > { %v1322_v29 = vld [vmem:[#allocation11 + $0x8] sm:$0xff]  ;;  %s2110_s14 = scalar_lea.vmem [#allocation15], %s1262_s11  ;;  %s1820_s3 = smov 8   ;;  %vm961_vm3 = vcmask 130048   ;;  %vm963_vm4 = vcmask 195584  }
  0x54   : > { %637 = vmatpush.bf16.msra.mxu0 %v1317_v2  ;;  %673 = vmatpush.bf16.msra.mxu1 %v1319_v3  ;;  %v1455_v46 = vld [vmem:[%s2202_s9] ss:$0 sm:$0xff]  ;;  %s1821_s25 = smov 24   ;;  %s1822_s30 = smov 16  }
  0x55   : > { %708 = vmatpush.bf16.msra.mxu2 %v1322_v29  ;;  %s1325_s16 = sshll.u32 %s1801_s24, 5  ;;  %s2250_s6 = sld [smem:[#allocation37_spill]] }
  0x56   : > { %s1037_s12 = sshll.u32 %s2110_s14, 4  ;;  %s1009_s18 = scalar_lea.sflag [#allocation16], %s2046_s21  ;;  %s1038_s12 = int_to_ptr.vmem [resolvable:$true] %s1037_s12 }
  0x57   : > { %1271 = vmatmul.msk.bf16.vlgmr.msra.gmra.mxu0 %vm626_vm0, %v603_v4  ;;  %1280 = vmatmul.msk.bf16.vlgmr.msra.gmra.mxu1 %vm626_vm0, %v604_v5 }
  0x59   : > { %709 = vmatpush.bf16.msra.mxu2 %v1321_v30 }
  0x5b   : > { %s1036_s0 = scalar_lea.hbm %s2250_s6, %s1325_s16 }
  0x5c   : > { %1289 = vmatmul.msk.bf16.vlgmr.msra.gmra.mxu2 %vm626_vm0, %v605_v31  ;;  %s1039_s13 = sshll.u32 %s1036_s0, 4  ;;  %s1040_s13 = int_to_ptr.hbm [resolvable:$true] %s1039_s13 }
  0x5d   : > { %s1697_s19 = sshra.s32 %s1040_s13, 4  ;;  %s1698_s19 = int_to_ptr.hbm [resolvable:$true] %s1697_s19 }
  0x5e   : > { %s1699_s15 = scalar_lea.hbm %s1698_s19, 32  ;;  %p1704_p10 = scmp.lt.s32.totalorder %s1698_s19, %s2250_s6 }
  0x5f   : > { %p1700_p1 = scmp.ne.s32.totalorder %s1698_s19, %s1699_s15 }
  0x61   : > { %p1701_p3 = pnand %p1700_p1, %p1977_p2 }
  0x63   : > { %p1702_p5 = pneg %p1701_p3 }
  0xd4   : > { %v639_v8 = vpop.f32.mrf.mxu0  ;;  %v675_v9 = vpop.f32.mrf.mxu1 }
  0xd5   : > { %v640_v10 = vadd.f32 %v1453_v6, %v639_v8  ;;  %v676_v11 = vadd.f32 %v1454_v7, %v675_v9 }
  0xd7   : > { %v715_v12 = vpack.c.bf16 %v640_v10, %v640_v10  ;;  %v716_v13 = vpack.c.bf16 %v676_v11, %v676_v11 }
  0xd9   : > { %834 = vrot.lane.b32.xlu1 %v716_v13, %s1817_s28  ;;  %775 = vrot.lane.b32.xlu0 %v716_v13, %s1818_s10  ;;  %v722_v14 = vsel %vm717_vm1, %v716_v13, 0 }
  0xda   : > { %832 = vrot.lane.b32.xlu2 %v715_v12, %s1817_s28  ;;  %731 = vmatpush.bf16.xpose.msra.mxu3 %v722_v14 }
  0xdc   : > { %v641_v15 = vpop.f32.mrf.mxu0  ;;  %v677_v16 = vpop.f32.mrf.mxu1 }
  0xdf   : > { %v711_v47 = vpop.f32.mrf.mxu2 }
  0xe0   : > { %v712_v48 = vadd.f32 %v1455_v46, %v711_v47 }
  0xe1   : > { %892 = vrot.lane.b32.xlu1 %v716_v13, %s1819_s26  ;;  %772 = vrot.lane.b32.xlu0 %v715_v12, %s1818_s10 }
  0xe2   : > { %890 = vrot.lane.b32.xlu2 %v715_v12, %s1819_s26  ;;  %1290 = vmatmul.msk.bf16.vlgmr.msra.gmra.mxu3 %vm717_vm1, %v715_v12  ;;  %v750_v49 = vpack.c.bf16 %v712_v48, %v712_v48 }
  0xe4   : > { %v756_v50 = vsel %vm754_vm2, %v750_v49, 0 }
  0xe5   : > { %765 = vmatpush.bf16.msrb.mxu0 %v756_v50 }
  0xe7   : > { %v713_v52 = vpop.f32.mrf.mxu2 }
 0x134   : > { %v833_v21 = vpop.permute.xlu2 %832 }
 0x13c   : > { %v891_v25 = vpop.permute.xlu2 %890 }
 0x14b   : > { %v835_v17 = vpop.permute.xlu1 %834  ;;  %v776_v18 = vpop.permute.xlu0 %775 }
 0x14c   : > { %v781_v19 = vsel %vm717_vm1, %v776_v18, 0  ;;  %v840_v20 = vsel %vm717_vm1, %v835_v17, 0 }
 0x14d   : > { %790 = vmatpush.bf16.xpose.msrb.mxu1 %v781_v19  ;;  %849 = vmatpush.bf16.xpose.msrb.mxu3 %v840_v20 }
 0x153   : > { %v893_v22 = vpop.permute.xlu1 %892  ;;  %v773_v23 = vpop.permute.xlu0 %772 }
 0x154   : > { %v898_v24 = vsel %vm717_vm1, %v893_v22, 0  ;;  %1292 = vmatmul.msk.bf16.vlgmr.msrb.gmra.mxu1 %vm717_vm1, %v773_v23  ;;  %1295 = vmatmul.msk.bf16.vlgmr.msrb.gmra.mxu3 %vm717_vm1, %v833_v21 }
 0x155   : > { %907 = vmatpush.bf16.xpose.msra.mxu1 %v898_v24 }
 0x164   : > { %1298 = vmatmul.msk.bf16.vlgmr.msra.gmra.mxu1 %vm717_vm1, %v891_v25 }
 0x165   : > { %v733_v26 = vpop.f32.mrf.mxu3 }
 0x166   : > { %v737_v27 = vsel %vm717_vm1, %v733_v26, -inf }
 0x167   : > { %738 = vmax.xlane.f32.xlu1 %v737_v27 }
 0x16d   : > { %v735_v28 = vpop.f32.mrf.mxu3 }
 0x1d1   : > { %v792_v32 = vpop.f32.mrf.mxu1 }
 0x1d2   : > { %v796_v33 = vsel %vm717_vm1, %v792_v32, -inf }
 0x1d3   : > { %797 = vmax.xlane.f32.xlu0 %v796_v33  ;;  %v1324_v33 = vld [vmem:[#allocation13 + $0x8] sm:$0xff] }
 0x1d4   : > { %995 = vmatpush.bf16.msra.mxu3 %v1324_v33 }
 0x1d7   : > { %v851_v34 = vpop.f32.mrf.mxu3 }
 0x1d8   : > { %v855_v45 = vsel %vm717_vm1, %v851_v34, -inf }
 0x1d9   : > { %v794_v35 = vpop.f32.mrf.mxu1 }
 0x1da   : > { %v739_v36 = vpop.xlane.xlu1 %738 }
 0x1db   : > { %v740_v37 = vsub.f32 %v733_v26, %v739_v36 }
 0x1dd   : > { %v741_v38 = vmul.f32 1.442695, %v740_v37 }
 0x1df   : > { %1457 = vpow2.f32 %v741_v38  ;;  %v853_v39 = vpop.f32.mrf.mxu3 }
 0x1e1   : > { %v909_v40 = vpop.f32.mrf.mxu1 }
 0x1e2   : > { %v913_v41 = vsel %vm717_vm1, %v909_v40, -inf }
 0x1e3   : > { %914 = vmax.xlane.f32.xlu2 %v913_v41 }
 0x1e5   : > { %v1458_v42 = vpop.eup %1457 }
 0x1e6   : > { %v743_v43 = vsel %vm717_vm1, %v1458_v42, 0.0 }
 0x1e7   : > { %744 = vadd.xlane.f32.xlu1 %v743_v43 }
 0x1e9   : > { %v911_v44 = vpop.f32.mrf.mxu1 }
 0x1eb   : > { %856 = vmax.xlane.f32.xlu2 %v855_v45 }
 0x203   : > { %811 = vrot.lane.b32.xlu2 %v750_v49, %s1818_s10 }
 0x246   : > { %v798_v51 = vpop.xlane.xlu0 %797 }
 0x247   : > { %v799_v53 = vsub.f32 %v792_v32, %v798_v51 }
 0x249   : > { %v800_v54 = vmul.f32 1.442695, %v799_v53 }
 0x24b   : > { %1459 = vpow2.f32 %v800_v54 }
 0x251   : > { %v1460_v55 = vpop.eup %1459 }
 0x252   : > { %v802_v56 = vsel %vm717_vm1, %v1460_v55, 0.0 }
 0x253   : > { %803 = vadd.xlane.f32.xlu0 %v802_v56 }
 0x256   : > { %v915_v57 = vpop.xlane.xlu2 %914 }
 0x257   : > { %v916_v58 = vsub.f32 %v909_v40, %v915_v57 }
 0x259   : > { %v917_v59 = vmul.f32 1.442695, %v916_v58 }
 0x25a   : > { %v745_v60 = vpop.xlane.xlu1 %744 }
 0x25b   : > { %1461 = vpow2.f32 %v917_v59 }
 0x25c   : > { %1463 = vrcp.f32 %v745_v60 }
 0x25e   : > { %v857_v61 = vpop.xlane.xlu2 %856 }
 0x25f   : > { %v858_v62 = vsub.f32 %v851_v34, %v857_v61  ;;  %v1323_v34 = vld [vmem:[#allocation13] sm:$0xff] }
 0x260   : > { %996 = vmatpush.bf16.msra.mxu3 %v1323_v34 }
 0x261   : > { %v1462_v63 = vpop.eup %1461  ;;  %v859_v0 = vmul.f32 1.442695, %v858_v62 }
 0x262   : > { %v1464_v1 = vpop.eup %1463  ;;  %v919_v2 = vsel %vm717_vm1, %v1462_v63, 0.0 }
 0x263   : > { %v747_v3 = vmul.f32 %v1464_v1, %v1458_v42  ;;  %1465 = vpow2.f32 %v859_v0  ;;  %920 = vadd.xlane.f32.xlu0 %v919_v2 }
 0x265   : > { %748 = vst.msk [vmem:[%s2110_s14] sm:$0xff] %vm717_vm1, %v747_v3  ;;  %v749_v4 = vpack.c.bf16 %v747_v3, %v747_v3 }
 0x266   : > { %v812_v7 = vpop.permute.xlu2 %811 }
 0x267   : > { %1291 = vmatmul.msk.bf16.vlgmr.msrb.gmra.mxu0 %vm717_vm1, %v749_v4  ;;  %v817_v8 = vsel %vm754_vm2, %v812_v7, 0 }
 0x268   : > { %826 = vmatpush.bf16.msrb.mxu2 %v817_v8 }
 0x269   : > { %v1466_v5 = vpop.eup %1465 }
 0x26a   : > { %v861_v6 = vsel %vm717_vm1, %v1466_v5, 0.0 }
 0x26b   : > { %862 = vadd.xlane.f32.xlu1 %v861_v6 }
 0x277   : > { %927 = vrot.lane.b32.xlu0 %v750_v49, %s1819_s26 }
 0x284   : > { %869 = vrot.lane.b32.xlu1 %v750_v49, %s1817_s28  ;;  %s1703_s28 = scalar_lea.hbm %s2250_s6, 64 }
 0x285   : > { %p1705_p11 = scmp.lt.s32.totalorder %s1703_s28, %s1699_s15 }
 0x287   : > { %p1706_p12 = por %p1705_p11, %p1704_p10 }
 0x289   : > { %p1707_p13 = pnand %p1706_p12, %p1702_p5 }
 0x2c6   : > { %v804_v9 = vpop.xlane.xlu0 %803 }
 0x2c7   : > { %1467 = vrcp.f32 %v804_v9 }
 0x2cd   : > { %v1468_v10 = vpop.eup %1467 }
 0x2ce   : > { %v806_v11 = vmul.f32 %v1468_v10, %v1460_v55 }
 0x2d0   : > { %1293 = vst.msk [vmem:[%s2110_s14 + $0x8] sm:$0xff] %vm717_vm1, %v806_v11  ;;  %v809_v12 = vpack.c.bf16 %v806_v11, %v806_v11 }
 0x2d2   : > { %1294 = vmatmul.msk.bf16.vlgmr.msrb.gmra.mxu2 %vm717_vm1, %v809_v12 }
 0x2d6   : > { %v921_v13 = vpop.xlane.xlu0 %920 }
 0x2d7   : > { %1469 = vrcp.f32 %v921_v13 }
 0x2dd   : > { %v1470_v14 = vpop.eup %1469 }
 0x2de   : > { %v923_v15 = vmul.f32 %v1470_v14, %v1462_v63  ;;  %v863_v16 = vpop.xlane.xlu1 %862 }
 0x2df   : > { %1471 = vrcp.f32 %v863_v16 }
 0x2e0   : > { %1299 = vst.msk [vmem:[%s2110_s14 + $0x18] sm:$0xff] %vm717_vm1, %v923_v15  ;;  %v926_v22 = vpack.c.bf16 %v923_v15, %v923_v15 }
 0x2e4   : > { %v767_v17 = vpop.f32.mrf.mxu0 }
 0x2e5   : > { %v1472_v18 = vpop.eup %1471 }
 0x2e6   : > { %v865_v19 = vmul.f32 %v1472_v18, %v1466_v5 }
 0x2e8   : > { %1296 = vst.msk [vmem:[%s2110_s14 + $0x10] sm:$0xff] %vm717_vm1, %v865_v19  ;;  %v868_v26 = vpack.c.bf16 %v865_v19, %v865_v19 }
 0x2e9   : > { %v928_v20 = vpop.permute.xlu0 %927 }
 0x2ea   : > { %v933_v21 = vsel %vm754_vm2, %v928_v20, 0 }
 0x2eb   : > { %942 = vmatpush.bf16.msra.mxu2 %v933_v21 }
 0x2ec   : > { %v769_v23 = vpop.f32.mrf.mxu0 }
 0x2ee   : > { %1300 = vmatmul.msk.bf16.vlgmr.msra.gmra.mxu2 %vm717_vm1, %v926_v22 }
 0x2f6   : > { %v870_v24 = vpop.permute.xlu1 %869 }
 0x2f7   : > { %v875_v25 = vsel %vm754_vm2, %v870_v24, 0 }
 0x2f8   : > { %884 = vmatpush.bf16.msra.mxu0 %v875_v25 }
 0x2fb   : > { %1297 = vmatmul.msk.bf16.vlgmr.msra.gmra.mxu0 %vm717_vm1, %v868_v26 }
 0x355   : > { %v828_v27 = vpop.f32.mrf.mxu2 }
 0x356   : > { %949 = vrot.lane.b32.xlu2 %v828_v27, %s1820_s3 }
 0x35d   : > { %v830_v28 = vpop.f32.mrf.mxu2 }
 0x371   : > { %v944_v29 = vpop.f32.mrf.mxu2 }
 0x372   : > { %957 = vrot.lane.b32.xlu2 %v944_v29, %s1821_s25 }
 0x378   : > { %v886_v30 = vpop.f32.mrf.mxu0 }
 0x379   : > { %953 = vrot.lane.b32.xlu0 %v886_v30, %s1822_s30  ;;  %v946_v31 = vpop.f32.mrf.mxu2 }
 0x380   : > { %v888_v32 = vpop.f32.mrf.mxu0 }
 0x3b0   : > { %v950_v35 = vpop.permute.xlu2 %949 }
 0x3b1   : > { %v960_v36 = vsel %vm717_vm1, %v767_v17, %v950_v35 }
 0x3cc   : > { %v958_v38 = vpop.permute.xlu2 %957 }
 0x3eb   : > { %v954_v37 = vpop.permute.xlu0 %953 }
 0x3ec   : > { %v962_v39 = vsel %vm961_vm3, %v960_v36, %v954_v37 }
 0x3ed   : > { %v964_v40 = vsel %vm963_vm4, %v962_v39, %v958_v38 }
 0x3ee   : > { %v969_v41 = vpack.c.bf16 %v964_v40, %v964_v40 }
 0x3f0   : > { %1309 = vmatmul.msk.bf16.vlgmr.msra.gmra.mxu3 %vm626_vm0, %v969_v41 }
 0x3f1   : > { %1710 = shalt.err (!%p1707_p13)
}
 0x3f2   : > { %s1823_s1 = smov 128   ;;  %s1312_s17 = sshll.u32 %s1801_s24, 3 }
 0x3f3   : > { %1349 = dma.vmem_to_hbm [thread:$0]  (%p1977_p2), %s1038_s12, 512, %s1040_s13, %s1009_s18, %s1823_s1, %s1823_s1, %s1820_s3  }
 0x3f4   : > { %s1261_s11 = sshll.u32 %s2046_s21, 3  ;;  %s2251_s30 = sld [smem:[#allocation36_spill]] }
 0x3f5   : > { %s2252_s0 = sld [smem:[#allocation35_spill]]  ;;  %s594_s19 = scalar_lea.vmem [#allocation14], %s1261_s11 }
 0x3f6   : > { %s1022_s15 = sshll.u32 %s594_s19, 4  ;;  %s1004_s24 = scalar_lea.sflag [#allocation4], %s2046_s21  ;;  %s1023_s15 = int_to_ptr.vmem [resolvable:$true] %s1022_s15 }
 0x3fa   : > { %s1020_s16 = scalar_lea.hbm %s2251_s30, %s1312_s17  ;;  %s1731_s20 = scalar_lea.hbm %s2251_s30, 16 }
 0x3fb   : > { %v1456_v42 = vld [vmem:[%s2252_s0] ss:$0 sm:$0xff]  ;;  %s1024_s27 = sshll.u32 %s1020_s16, 4  ;;  %s1025_s27 = int_to_ptr.hbm [resolvable:$true] %s1024_s27 }
 0x3fc   : > { %s1725_s3 = sshra.s32 %s1025_s27, 4  ;;  %s1726_s3 = int_to_ptr.hbm [resolvable:$true] %s1725_s3 }
 0x3fd   : > { %s1727_s12 = scalar_lea.hbm %s1726_s3, 8  ;;  %p1732_p8 = scmp.lt.s32.totalorder %s1726_s3, %s2251_s30 }
 0x3fe   : > { %p1728_p0 = scmp.ne.s32.totalorder %s1726_s3, %s1727_s12  ;;  %p1733_p1 = scmp.lt.s32.totalorder %s1731_s20, %s1727_s12 }
 0x400   : > { %p1729_p4 = pnand %p1728_p0, %p1977_p2  ;;  %p1734_p3 = por %p1733_p1, %p1732_p8 }
 0x402   : > { %p1730_p9 = pneg %p1729_p4 }
 0x404   : > { %p1735_p5 = pnand %p1734_p3, %p1730_p9 }
 0x473   : > { %v998_v43 = vpop.f32.mrf.mxu3 }
 0x474   : > { %v999_v44 = vadd.f32 %v1456_v42, %v998_v43 }
 0x476   : > { %1002 = vst.msk [vmem:[%s594_s19] sm:$0xff] %vm626_vm0, %v999_v44 }
 0x477   : > { %1738 = shalt.err (!%p1735_p5)
}
 0x478   : > { %1348 = dma.vmem_to_hbm [thread:$0]  (%p1977_p2), %s1023_s15, 128, %s1025_s27, %s1004_s24  }
 0x47b   : > { %v1000_v45 = vpop.f32.mrf.mxu3 }
 0x47c PF: > { %s2253_s21 = sld [smem:[#allocation23_spill]]  ;;  %p1376_p10 = pnand %p1246_p6, %p1984_p7 }
 0x47d   : > { %s2255_s1 = sld [smem:[#allocation25_spill]] }
 0x47e   : > { %p1377_p11 = pneg %p1376_p10 }
 0x482   : > { %s1054_s17 = sand.u32 1, %s2253_s21  }
 0x483   : > { %s1055_s11 = scalar_lea.sflag [#allocation4], %s1054_s17 }
 0x484   : > { %1780 = dma.done.wait (%p1377_p11), %s1055_s11, 128  }
 0x485   : > { %1782 = vsyncadd (%p1377_p11), %s1055_s11, 4294967168  ;;  %s1065_s14 = scalar_lea.sflag [#allocation16], %s1054_s17 }
 0x486   : > { %1784 = dma.done.wait (%p1377_p11), %s1065_s14, 512  }
 0x487   : > { %1786 = vsyncadd (%p1377_p11), %s1065_s14, 4294966784  ;;  %s37_s26 = sadd.s32 1, %s2255_s1   ;;  %s2256_s29 = sld [smem:[#allocation27_spill]] }
 0x488   : > { %p34_p12 = scmp.ge.s32.totalorder %s37_s26, 4   ;;  %s2257_s24 = sld [smem:[#allocation24_spill]] }
 0x489   : > { %s2258_s25 = sld [smem:[#allocation26_spill]]  ;;  %s2259_s21 = smov %s1793_s22 }
 0x48a   : > { %s2260_s22 = smov %s1797_s23  ;;  %36 = sbr.rel (!%p34_p12) target bundleno = 22 (0x16), region = 169 }
 0x48d   : > { %s2261_s23 = smov %s2256_s29 }
 0x48f   :  { %1071 = vsyncpa [#allocation3], 1 }
 0x490   :  { %1073 = vsyncpa [#allocation3 + $0x1], 1 }
 0x491   :  { %1074 = vsyncpa [#allocation6], 1 }
 0x492   :  { %1076 = vsyncpa [#allocation6 + $0x1], 1 }
 0x493   :  { %1077 = vsyncpa [#allocation9], 1 }
 0x494   :  { %1078 = vsyncpa [#allocation12], 1 }
 0x495   :  { %1079 = vsyncpa [#allocation4], 1 }
 0x496   :  { %1081 = vsyncpa [#allocation4 + $0x1], 1 }
 0x497   :  { %1082 = vsyncpa [#allocation16], 1 }
 0x498   :  { %1084 = vsyncpa [#allocation16 + $0x1], 1 }

</bundles_post_ra>
